<compile_context>
chip_gen: v5e
topology: v5e:2x2
jax: 0.10.0
libtpu: 0.0.40
codegen_flags: <defaults>
</compile_context>

<pallas_src>
import math

import jax
import jax.numpy as jnp
from jax.experimental import pallas as pl
from jax.experimental.pallas import tpu as pltpu

_LANES = 128
_SUBLANES = 8


def _bce_sum_kernel(x_ref, y_ref, out_ref):
    """Accumulates per-block BCE-with-logits partial sums into a resident
    (1, 8, 128) output block (one per 'parallel' slice).

    per-element (numerically stable): max(x, 0) - x*y + log1p(exp(-|x|))
    """
    j = pl.program_id(1)

    @pl.when(j == 0)
    def _():
        out_ref[...] = jnp.zeros_like(out_ref)

    x = x_ref[...].astype(jnp.float32)
    y = y_ref[...].astype(jnp.float32)
    per = jnp.maximum(x, 0.0) - x * y + jnp.log1p(jnp.exp(-jnp.abs(x)))
    # Fold (block_rows, 128) -> (8, 128) with cross-vreg VPU adds only; the
    # cross-lane/sublane reduction is deferred to the wrapper epilogue.
    out_ref[...] += per.reshape(-1, _SUBLANES, _LANES).sum(axis=0)[None]


def emotion_classifier_loss(model_output: jax.Array, targets: jax.Array,
                            *, block_rows: int = 1024,
                            num_parallel: int = 2) -> jax.Array:
    """BCEWithLogitsLoss (mean over all elements), any input shape."""
    assert model_output.shape == targets.shape
    n = math.prod(model_output.shape)

    x = model_output.reshape(-1)
    y = targets.reshape(-1)

    rows = pl.cdiv(n, _LANES)
    rows8 = ((rows + _SUBLANES - 1) // _SUBLANES) * _SUBLANES

    if rows8 <= block_rows:
        # Tiny input: single block, no pipelining / parallel split overhead.
        num_p, br, inner = 1, rows8, 1
        padded_rows = rows8
    else:
        num_p, br = num_parallel, block_rows
        chunk = num_p * br
        padded_rows = ((rows8 + chunk - 1) // chunk) * chunk
        inner = padded_rows // chunk

    padded_n = padded_rows * _LANES
    pad = padded_n - n
    if pad:
        if jnp.issubdtype(x.dtype, jnp.floating):
            # Large finite negative logit -> BCE contribution is exactly 0.
            neg_big = jnp.asarray(-0.25 * float(jnp.finfo(x.dtype).max), x.dtype)
        else:
            neg_big = jnp.asarray(0, x.dtype)
        x = jnp.concatenate([x, jnp.full((pad,), neg_big, x.dtype)])
        y = jnp.concatenate([y, jnp.zeros((pad,), y.dtype)])

    x2 = x.reshape(padded_rows, _LANES)
    y2 = y.reshape(padded_rows, _LANES)

    in_map = lambda p, j: (p * inner + j, 0)

    partials = pl.pallas_call(
        _bce_sum_kernel,
        out_shape=jax.ShapeDtypeStruct((num_p, _SUBLANES, _LANES), jnp.float32),
        grid_spec=pltpu.PrefetchScalarGridSpec(
            num_scalar_prefetch=0,
            grid=(num_p, inner),
            in_specs=[
                pl.BlockSpec((br, _LANES), in_map),
                pl.BlockSpec((br, _LANES), in_map),
            ],
            out_specs=pl.BlockSpec((1, _SUBLANES, _LANES),
                                   lambda p, j: (p, 0, 0)),
        ),
        compiler_params=pltpu.CompilerParams(
            dimension_semantics=("parallel", "arbitrary")),
        cost_estimate=pl.CostEstimate(
            flops=6 * padded_n,
            transcendentals=2 * padded_n,
            bytes_accessed=x2.nbytes + y2.nbytes
            + num_p * _SUBLANES * _LANES * 4),
    )(x2, y2)

    # Final (tiny) reduction + mean normalization by the TRUE element count.
    return jnp.sum(partials) / jnp.float32(n)


def _reference(model_output, targets):
    x = model_output.astype(jnp.float32)
    y = targets.astype(jnp.float32)
    per = jnp.maximum(x, 0.0) - x * y + jnp.log1p(jnp.exp(-jnp.abs(x)))
    return jnp.mean(per)


if __name__ == "__main__":
    key = jax.random.PRNGKey(0)

    # Small shape matching the module (batch=16, num_emotion_classes=32):
    # exercises the single-block fast path.
    k1, k2, k3, k4 = jax.random.split(key, 4)
    logits = jax.random.normal(k1, (16, 32), dtype=jnp.float32)
    targets = (jax.random.uniform(k2, (16, 32)) > 0.5).astype(jnp.float32)
    loss = emotion_classifier_loss(logits, targets)
    jax.block_until_ready(loss)
    ref = _reference(logits, targets)
    assert jnp.allclose(loss, ref, rtol=1e-5, atol=1e-5), (loss, ref)

    # Moderate shape: exercises padding, the 2-way parallel axis and the
    # multi-step inner reduction axis.
    logits2 = jax.random.normal(k3, (2048, 257), dtype=jnp.float32)
    targets2 = (jax.random.uniform(k4, (2048, 257)) > 0.5).astype(jnp.float32)
    loss2 = emotion_classifier_loss(logits2, targets2)
    jax.block_until_ready(loss2)
    ref2 = _reference(logits2, targets2)
    assert jnp.allclose(loss2, ref2, rtol=1e-4, atol=1e-5), (loss2, ref2)

    print("KERNEL_OK")
</pallas_src>

<mosaic_0001>
module attributes {stable_mosaic.version = 11 : i64} {
  func.func @_bce_sum_kernel(%arg0: i32, %arg1: i32, %arg2: memref<8x128xf32, #tpu.memory_space<vmem>>, %arg3: memref<8x128xf32, #tpu.memory_space<vmem>>, %arg4: memref<1x8x128xf32, #tpu.memory_space<vmem>>) attributes {dimension_semantics = [#tpu.dimension_semantics<parallel>, #tpu.dimension_semantics<arbitrary>], iteration_bounds = array<i64: 1, 1>, scalar_prefetch = 0 : i64, scratch_operands = 0 : i64, tpu.core_type = #tpu.core_type<tc>, window_params = [{transform_indices = @transform_0, window_bounds = array<i64: 8, 128>}, {transform_indices = @transform_1, window_bounds = array<i64: 8, 128>}, {transform_indices = @transform_2, window_bounds = array<i64: 1, 8, 128>}]} {
    %c0_i32 = arith.constant 0 : i32
    %0 = arith.cmpi eq, %arg1, %c0_i32 : i32
    %1 = arith.extui %0 : i1 to i32
    %c0_i32_0 = arith.constant 0 : i32
    %2 = arith.cmpi ne, %1, %c0_i32_0 : i32
    scf.if %2 {
      %cst_12 = arith.constant 0.000000e+00 : f32
      %21 = vector.broadcast %cst_12 : f32 to vector<1x8x128xf32>
      %c0_13 = arith.constant 0 : index
      %c0_14 = arith.constant 0 : index
      %c0_15 = arith.constant 0 : index
      %22 = vector.load %arg4[%c0_13, %c0_14, %c0_15] : memref<1x8x128xf32, #tpu.memory_space<vmem>>, vector<1x8x128xf32>
      tpu.vector_store %arg4[%c0_13, %c0_14, %c0_15], %21 {strides = array<i32>} : memref<1x8x128xf32, #tpu.memory_space<vmem>>, vector<1x8x128xf32>,
    } else {
    }
    %c0 = arith.constant 0 : index
    %c0_1 = arith.constant 0 : index
    %3 = vector.load %arg2[%c0, %c0_1] : memref<8x128xf32, #tpu.memory_space<vmem>>, vector<8x128xf32>
    %c0_2 = arith.constant 0 : index
    %c0_3 = arith.constant 0 : index
    %4 = vector.load %arg3[%c0_2, %c0_3] : memref<8x128xf32, #tpu.memory_space<vmem>>, vector<8x128xf32>
    %cst = arith.constant 0.000000e+00 : f32
    %5 = vector.broadcast %cst : f32 to vector<8x128xf32>
    %6 = arith.maximumf %3, %5 : vector<8x128xf32>
    %7 = arith.mulf %3, %4 : vector<8x128xf32>
    %8 = arith.subf %6, %7 : vector<8x128xf32>
    %9 = math.absf %3 : vector<8x128xf32>
    %cst_4 = arith.constant 0.000000e+00 : f32
    %10 = vector.broadcast %cst_4 : f32 to vector<8x128xf32>
    %11 = arith.subf %10, %9 : vector<8x128xf32>
    %12 = math.exp %11 : vector<8x128xf32>
    %13 = math.log1p %12 : vector<8x128xf32>
    %14 = arith.addf %8, %13 : vector<8x128xf32>
    %c0_5 = arith.constant 0 : index
    %c0_6 = arith.constant 0 : index
    %c0_7 = arith.constant 0 : index
    %15 = vector.load %arg4[%c0_5, %c0_6, %c0_7] : memref<1x8x128xf32, #tpu.memory_space<vmem>>, vector<1x8x128xf32>
    %16 = vector.shape_cast %14 : vector<8x128xf32> to vector<1x8x128xf32>
    %cst_8 = arith.constant dense<0.000000e+00> : vector<8x128xf32>
    %17 = vector.multi_reduction <add>, %16, %cst_8 [0] : vector<1x8x128xf32> to vector<8x128xf32>
    %18 = vector.shape_cast %17 : vector<8x128xf32> to vector<1x8x128xf32>
    %19 = arith.addf %15, %18 : vector<1x8x128xf32>
    %c0_9 = arith.constant 0 : index
    %c0_10 = arith.constant 0 : index
    %c0_11 = arith.constant 0 : index
    %20 = vector.load %arg4[%c0_9, %c0_10, %c0_11] : memref<1x8x128xf32, #tpu.memory_space<vmem>>, vector<1x8x128xf32>
    tpu.vector_store %arg4[%c0_9, %c0_10, %c0_11], %19 {strides = array<i32>} : memref<1x8x128xf32, #tpu.memory_space<vmem>>, vector<1x8x128xf32>,
    return
  }
  func.func @transform_0(%arg0: i32, %arg1: i32) -> (i32, i32) {
    %c1_i32 = arith.constant 1 : i32
    %0 = arith.muli %arg0, %c1_i32 : i32
    %1 = arith.addi %0, %arg1 : i32
    %c0_i32 = arith.constant 0 : i32
    %c0_i32_0 = arith.constant 0 : i32
    return %1, %c0_i32 : i32, i32
  }
  func.func @transform_1(%arg0: i32, %arg1: i32) -> (i32, i32) {
    %c1_i32 = arith.constant 1 : i32
    %0 = arith.muli %arg0, %c1_i32 : i32
    %1 = arith.addi %0, %arg1 : i32
    %c0_i32 = arith.constant 0 : i32
    %c0_i32_0 = arith.constant 0 : i32
    return %1, %c0_i32 : i32, i32
  }
  func.func @transform_2(%arg0: i32, %arg1: i32) -> (i32, i32, i32) {
    %c0_i32 = arith.constant 0 : i32
    %c0_i32_0 = arith.constant 0 : i32
    %c0_i32_1 = arith.constant 0 : i32
    return %arg0, %c0_i32, %c0_i32_0 : i32, i32, i32
  }
}

</mosaic_0001>

<bundles_post_ra>
// kernel: tpu_custom_call.1
= control target key start
LH: loop header
LB: loop body
LE: loop exit
PB: predicated region body
PF: predicated region fallthrough
CT: control target
= control target key end

     0   :  { %7 = vsyncpa [#allocation3], 0  ;;  %s207_s0 = inlined_call_operand.hbm [shape: f32[8,128], index: 0, kind: input, shape index: {}]   ;;  %s208_s1 = inlined_call_operand.hbm [shape: f32[8,128], index: 1, kind: input, shape index: {}]   ;;  %s209_s2 = inlined_call_operand.hbm [shape: f32[1,8,128], index: 2, kind: output, shape index: {}]  }
   0x1   :  { %8 = vsyncpa [#allocation6], 0 }
   0x2   :  { %9 = vsyncpa [#allocation4], 0  ;;  %s18_s11 = sshll.u32 %s207_s0, 4  ;;  %s180_s12 = smov [#allocation2]   ;;  %s19_s11 = int_to_ptr.hbm [resolvable:$true] %s18_s11 }
   0x3   :  { %s20_s13 = sshll.u32 %s180_s12, 4  ;;  %s32_s16 = sshll.u32 %s208_s1, 4  ;;  %s21_s13 = int_to_ptr.vmem [resolvable:$true] %s20_s13  ;;  %s33_s16 = int_to_ptr.hbm [resolvable:$true] %s32_s16 }
   0x4   :  { %23 = dma.hbm_to_vmem [thread:$0]  %s19_s11, 128, %s21_s13, [#allocation3]  }
   0x5   :  { %s181_s17 = smov [#allocation5]  }
   0x6   :  { %s34_s18 = sshll.u32 %s181_s17, 4  ;;  %s35_s18 = int_to_ptr.vmem [resolvable:$true] %s34_s18 }
   0x7   :  { %37 = dma.hbm_to_vmem [thread:$0]  %s33_s16, 128, %s35_s18, [#allocation6]  }
   0x8   :  { %174 = dma.done.wait [#allocation3], 128  }
   0x9   :  { %175 = vsyncadd [#allocation3], 4294967168 }
   0xa   :  { %176 = dma.done.wait [#allocation6], 128  }
   0xb   :  { %177 = vsyncadd [#allocation6], 4294967168  ;;  %v53_v0 = vld [vmem:[#allocation2] sm:$0xff]  ;;  %v54_v7 = vld [vmem:[#allocation5] sm:$0xff]  ;;  %s182_s0 = smov [#allocation7]   ;;  %s83_s21 = sshll.u32 %s209_s2, 4  ;;  %s84_s21 = int_to_ptr.hbm [resolvable:$true] %s83_s21 }
   0xc   :  { %v58_v1 = vand.u32 2147483647, %v53_v0  ;;  %v55_v9 = vmax.f32 %v53_v0, 0.0  ;;  %v56_v10 = vmul.f32 %v54_v7, %v53_v0  ;;  %s81_s1 = sshll.u32 %s182_s0, 4  ;;  %s82_s1 = int_to_ptr.vmem [resolvable:$true] %s81_s1 }
   0xe   :  { %v59_v2 = vsub.f32 0.0, %v58_v1  ;;  %v57_v14 = vsub.f32 %v55_v9, %v56_v10 }
  0x10   :  { %v60_v3 = vmul.f32 1.442695, %v59_v2 }
  0x12   :  { %98 = vpow2.f32 %v60_v3 }
  0x18   :  { %v99_v4 = vpop.eup %98 }
  0x19   :  { %v62_v5 = vadd.f32 1.0, %v99_v4  ;;  %v65_v6 = vmul.f32 -0.5, %v99_v4  ;;  %v68_v11 = vand.u32 2147483647, %v99_v4 }
  0x1b   :  { %100 = vlog2.f32 %v62_v5  ;;  %v66_v8 = vadd.f32 1.0, %v65_v6  ;;  %vm69_vm0 = vcmp.lt.f32.partialorder %v68_v11, 0.0004427343 }
  0x1d   :  { %v67_v12 = vmul.f32 %v99_v4, %v66_v8 }
  0x21   :  { %v101_v13 = vpop.eup %100 }
  0x22   :  { %v64_v15 = vmul.f32 0.6931472, %v101_v13 }
  0x24   :  { %v70_v16 = vsel %vm69_vm0, %v67_v12, %v64_v15 }
  0x25   :  { %v71_v17 = vadd.f32 %v70_v16, %v57_v14 }
  0x27   :  { %75 = vst [vmem:[#allocation7] sm:$0xff] %v71_v17 }
  0x28   :  { %86 = dma.vmem_to_hbm [thread:$0]  %s82_s1, 128, %s84_s21, [#allocation4]  }
  0x29   :  { %178 = dma.done.wait [#allocation4], 128  }
  0x2a   :  { %179 = vsyncadd [#allocation4], 4294967168 }
  0x2b   :  { %91 = vsyncpa [#allocation3], 1 }
  0x2c   :  { %92 = vsyncpa [#allocation6], 1 }
  0x2d   :  { %93 = vsyncpa [#allocation4], 1 }

</bundles_post_ra>
